<compile_context>
chip_gen: v6e
topology: v6e:2x2x1
jax: 0.10.0
libtpu: 0.0.40
codegen_flags: <defaults>
</compile_context>

<pallas_src>
import jax
import jax.numpy as jnp
from jax.experimental import pallas as pl
from jax.experimental.pallas import tpu as pltpu

LEAKY_SLOPE = 0.01   # nn.LeakyReLU default negative_slope
BN_EPS = 1e-5        # nn.BatchNorm1d default eps
L2_EPS = 1e-12       # F.normalize default eps


def _round_up(x, m):
    return (x + m - 1) // m * m


def _cdiv(a, b):
    return -(-a // b)


# ----------------------------------------------------------------------------
# Fused EmbedBranch kernel
#   fc1 (Linear with BN pre-folded) -> LeakyReLU -> [Dropout = id, eval] ->
#   fc2 (Linear) -> L2 normalize, stored at the exact metric width.
# ----------------------------------------------------------------------------
def embed_branch_kernel(x_ref, w1_ref, b1_ref, w2_ref, b2_ref, o_ref):
    # fc1: Linear + BatchNorm1d(eval) folded into (w1, b1); hidden dim is
    # zero-padded to a 128-lane multiple, so h is lane-dense.
    h = jnp.dot(x_ref[...], w1_ref[...],
                preferred_element_type=jnp.float32) + b1_ref[...]
    # LeakyReLU as a single VALU max (== where(h>=0, h, 0.01*h))
    h = jnp.maximum(h, LEAKY_SLOPE * h)
    # TODO(synk): nn.Dropout is identity in eval mode; train-mode RNG masking
    # is not implemented here.
    # fc2
    y = jnp.dot(h, w2_ref[...],
                preferred_element_type=jnp.float32) + b2_ref[...]
    # F.normalize(dim=1): y / max(||y||, eps)  ==  y * rsqrt(max(||y||^2, eps^2))
    ss = jnp.sum(y * y, axis=-1, keepdims=True)
    o_ref[...] = y * jax.lax.rsqrt(jnp.maximum(ss, L2_EPS * L2_EPS))


# ----------------------------------------------------------------------------
# One-time parameter prep (call at model-setup time, NOT inside every forward)
# ----------------------------------------------------------------------------
def prepare_embed_branch_params(p):
    """Fold eval-mode BatchNorm1d into fc1 and zero-pad the hidden dim to a
    128-lane multiple.  Numerically exact: padded hidden columns are zero and
    the matching w2 rows are zero, so they contribute nothing downstream."""
    scale = p["gamma"] * jax.lax.rsqrt(p["var"] + BN_EPS)        # [1, E]
    w1 = p["w1"] * scale                                         # [F, E]
    b1 = (p["b1"] - p["mean"]) * scale + p["beta"]               # [1, E]
    w2, b2 = p["w2"], p["b2"]
    e_dim = w1.shape[1]
    e_pad = _round_up(e_dim, 128)
    if e_pad != e_dim:
        w1 = jnp.pad(w1, ((0, 0), (0, e_pad - e_dim)))
        b1 = jnp.pad(b1, ((0, 0), (0, e_pad - e_dim)))
        w2 = jnp.pad(w2, ((0, e_pad - e_dim), (0, 0)))
    return dict(w1=w1, b1=b1, w2=w2, b2=b2)


# ----------------------------------------------------------------------------
# Forward wrapper: exactly one pallas_call, no pre-pad / post-slice HBM copies
# ----------------------------------------------------------------------------
def embed_branch(x, prep, *, block_rows=1024):
    """EmbedBranch forward (eval mode).
    x: [N, feat_dim] f32; prep from prepare_embed_branch_params.
    Returns [N, metric_dim] f32."""
    n, f_in = x.shape
    w1, b1, w2, b2 = prep["w1"], prep["b1"], prep["w2"], prep["b2"]
    e_pad = w1.shape[1]
    m_dim = w2.shape[1]

    # Row tile: large enough to amortize per-grid-step overhead, sublane
    # aligned, and never so large that the grid collapses to a single step
    # when n > 8 (so the "parallel" axis can split across v7x's 2 TCs).
    tm = max(8, min(_round_up(block_rows, 8), _round_up(_cdiv(n, 2), 8)))
    # Soft VMEM cap on the double-buffered x/out tiles (conservative for
    # v7x's smaller scoped-VMEM default; weights are also double-buffered).
    vmem_budget = 16 * 1024 * 1024
    tm_cap = max(8, (vmem_budget // (8 * (f_in + m_dim))) // 8 * 8)
    tm = min(tm, tm_cap)
    grid = (_cdiv(n, tm),)

    flops = (2 * n * f_in * e_pad + 2 * n * e_pad * m_dim
             + 6 * n * (e_pad + m_dim))
    bytes_accessed = 4 * (n * f_in + n * m_dim
                          + f_in * e_pad + e_pad + e_pad * m_dim + m_dim)

    return pl.pallas_call(
        embed_branch_kernel,
        out_shape=jax.ShapeDtypeStruct((n, m_dim), jnp.float32),
        grid_spec=pltpu.PrefetchScalarGridSpec(
            num_scalar_prefetch=0,
            grid=grid,
            in_specs=[
                pl.BlockSpec((tm, f_in), lambda i: (i, 0)),      # x row tile
                # Constant-index blocks stay VMEM-resident across the grid.
                # TODO(synk): for very large weights on v7x (64 MiB VMEM),
                # add pipeline_mode=pl.Buffered(1) to single-buffer them.
                pl.BlockSpec((f_in, e_pad), lambda i: (0, 0)),   # w1 (BN folded)
                pl.BlockSpec((1, e_pad), lambda i: (0, 0)),      # b1
                pl.BlockSpec((e_pad, m_dim), lambda i: (0, 0)),  # w2
                pl.BlockSpec((1, m_dim), lambda i: (0, 0)),      # b2
            ],
            out_specs=pl.BlockSpec((tm, m_dim), lambda i: (i, 0)),
        ),
        compiler_params=pltpu.CompilerParams(
            dimension_semantics=("parallel",)),
        cost_estimate=pl.CostEstimate(flops=flops,
                                      transcendentals=n,
                                      bytes_accessed=bytes_accessed),
    )(x, w1, b1, w2, b2)


# ----------------------------------------------------------------------------
# Pure-JAX reference (unfolded BN, plain sqrt/divide normalize) for checking
# ----------------------------------------------------------------------------
def embed_branch_ref(x, p):
    h = x @ p["w1"] + p["b1"]
    inv = jax.lax.rsqrt(p["var"] + BN_EPS)
    h = (h - p["mean"]) * inv * p["gamma"] + p["beta"]
    h = jnp.where(h >= 0, h, LEAKY_SLOPE * h)
    y = h @ p["w2"] + p["b2"]
    norm = jnp.sqrt(jnp.sum(y * y, axis=-1, keepdims=True))
    return y / jnp.maximum(norm, L2_EPS)


# ----------------------------------------------------------------------------
# Deterministic init (mirrors init_weights: kaiming_normal_ weights, bias 0.01)
# ----------------------------------------------------------------------------
def init_linear(key, f_in, f_out):
    std = (2.0 / f_in) ** 0.5
    w = jax.random.normal(key, (f_in, f_out), jnp.float32) * std
    b = jnp.full((1, f_out), 0.01, jnp.float32)
    return w, b


def init_embed_branch(key, feat_dim, embedding_dim, metric_dim):
    k1, k2, k3, k4, k5, k6 = jax.random.split(key, 6)
    w1, b1 = init_linear(k1, feat_dim, embedding_dim)
    w2, b2 = init_linear(k2, embedding_dim, metric_dim)
    # Non-trivial eval-mode BN statistics so the BN-folding path is exercised.
    gamma = 1.0 + 0.1 * jax.random.normal(k3, (1, embedding_dim), jnp.float32)
    beta = 0.1 * jax.random.normal(k4, (1, embedding_dim), jnp.float32)
    mean = 0.1 * jax.random.normal(k5, (1, embedding_dim), jnp.float32)
    var = jnp.abs(1.0 + 0.1 * jax.random.normal(k6, (1, embedding_dim),
                                                jnp.float32))
    return dict(w1=w1, b1=b1, gamma=gamma, beta=beta, mean=mean, var=var,
                w2=w2, b2=b2)


if __name__ == "__main__":
    feat_dim = 64
    embedding_dim = 32
    metric_dim = 16
    n = 24                      # batch of samples

    key = jax.random.PRNGKey(0)
    k_params, k_data = jax.random.split(key)
    params = init_embed_branch(k_params, feat_dim, embedding_dim, metric_dim)
    x = jax.random.normal(k_data, (n, feat_dim), jnp.float32)

    # One-time prep (BN folding + hidden-dim padding) at "model setup" time.
    prep = prepare_embed_branch_params(params)
    prep = jax.tree_util.tree_map(jax.block_until_ready, prep)

    # Default block_rows: with n=24 the wrapper picks tm=16 -> a 2-step
    # "parallel" grid with a ragged last block, exercising both the megacore
    # path and the no-pad/no-slice edge handling.
    fwd = jax.jit(embed_branch)
    out = fwd(x, prep)
    jax.block_until_ready(out)

    ref = embed_branch_ref(x, params)
    assert out.shape == (n, metric_dim)
    assert bool(jnp.all(jnp.isfinite(out)))
    assert bool(jnp.allclose(out, ref, atol=1e-4, rtol=1e-4)), (
        float(jnp.max(jnp.abs(out - ref))))
    print("KERNEL_OK")
</pallas_src>

<mosaic_0001>
module attributes {stable_mosaic.version = 11 : i64} {
  func.func @embed_branch_kernel(%arg0: i32, %arg1: memref<16x64xf32, #tpu.memory_space<vmem>>, %arg2: memref<64x128xf32, #tpu.memory_space<vmem>>, %arg3: memref<1x128xf32, #tpu.memory_space<vmem>>, %arg4: memref<128x16xf32, #tpu.memory_space<vmem>>, %arg5: memref<1x16xf32, #tpu.memory_space<vmem>>, %arg6: memref<16x16xf32, #tpu.memory_space<vmem>>) attributes {dimension_semantics = [#tpu.dimension_semantics<parallel>], iteration_bounds = array<i64: 2>, scalar_prefetch = 0 : i64, scratch_operands = 0 : i64, tpu.core_type = #tpu.core_type<tc>, window_params = [{transform_indices = @transform_0, window_bounds = array<i64: 16, 64>}, {pipeline_mode = #tpu.pipeline_mode<synchronous>, transform_indices = @transform_1, window_bounds = array<i64: 64, 128>}, {pipeline_mode = #tpu.pipeline_mode<synchronous>, transform_indices = @transform_2, window_bounds = array<i64: 1, 128>}, {pipeline_mode = #tpu.pipeline_mode<synchronous>, transform_indices = @transform_3, window_bounds = array<i64: 128, 16>}, {pipeline_mode = #tpu.pipeline_mode<synchronous>, transform_indices = @transform_4, window_bounds = array<i64: 1, 16>}, {transform_indices = @transform_5, window_bounds = array<i64: 16, 16>}]} {
    %c0 = arith.constant 0 : index
    %c0_0 = arith.constant 0 : index
    %0 = vector.load %arg1[%c0, %c0_0] : memref<16x64xf32, #tpu.memory_space<vmem>>, vector<16x64xf32>
    %c0_1 = arith.constant 0 : index
    %c0_2 = arith.constant 0 : index
    %1 = vector.load %arg2[%c0_1, %c0_2] : memref<64x128xf32, #tpu.memory_space<vmem>>, vector<64x128xf32>
    %cst = arith.constant dense<0.000000e+00> : vector<16x128xf32>
    %2 = tpu.matmul %0, %1, %cst {dimension_numbers = #tpu.dot_dimension_numbers<[1], [0], [0], [1], [0, 0, 1, 1], [], []>} : vector<16x64xf32>, vector<64x128xf32>, vector<16x128xf32> -> vector<16x128xf32>
    %c0_3 = arith.constant 0 : index
    %c0_4 = arith.constant 0 : index
    %3 = vector.load %arg3[%c0_3, %c0_4] : memref<1x128xf32, #tpu.memory_space<vmem>>, vector<1x128xf32>
    %4 = vector.broadcast %3 : vector<1x128xf32> to vector<16x128xf32>
    %5 = arith.addf %2, %4 : vector<16x128xf32>
    %cst_5 = arith.constant 0.00999999977 : f32
    %6 = vector.broadcast %cst_5 : f32 to vector<16x128xf32>
    %7 = arith.mulf %6, %5 : vector<16x128xf32>
    %8 = arith.maximumf %5, %7 : vector<16x128xf32>
    %c0_6 = arith.constant 0 : index
    %c0_7 = arith.constant 0 : index
    %9 = vector.load %arg4[%c0_6, %c0_7] : memref<128x16xf32, #tpu.memory_space<vmem>>, vector<128x16xf32>
    %cst_8 = arith.constant dense<0.000000e+00> : vector<16x16xf32>
    %10 = tpu.matmul %8, %9, %cst_8 {dimension_numbers = #tpu.dot_dimension_numbers<[1], [0], [0], [1], [0, 0, 1, 1], [], []>} : vector<16x128xf32>, vector<128x16xf32>, vector<16x16xf32> -> vector<16x16xf32>
    %c0_9 = arith.constant 0 : index
    %c0_10 = arith.constant 0 : index
    %11 = vector.load %arg5[%c0_9, %c0_10] : memref<1x16xf32, #tpu.memory_space<vmem>>, vector<1x16xf32>
    %12 = vector.broadcast %11 : vector<1x16xf32> to vector<16x16xf32>
    %13 = arith.addf %10, %12 : vector<16x16xf32>
    %14 = arith.mulf %13, %13 : vector<16x16xf32>
    %cst_11 = arith.constant dense<0.000000e+00> : vector<16xf32>
    %15 = vector.multi_reduction <add>, %14, %cst_11 [1] : vector<16x16xf32> to vector<16xf32>
    %16 = vector.shape_cast %15 : vector<16xf32> to vector<16x1xf32>
    %cst_12 = arith.constant 1.000000e-24 : f32
    %17 = vector.broadcast %cst_12 : f32 to vector<16x1xf32>
    %18 = arith.maximumf %16, %17 : vector<16x1xf32>
    %19 = math.rsqrt %18 : vector<16x1xf32>
    %20 = vector.broadcast %19 : vector<16x1xf32> to vector<16x16xf32>
    %21 = arith.mulf %13, %20 : vector<16x16xf32>
    %c0_13 = arith.constant 0 : index
    %c0_14 = arith.constant 0 : index
    %22 = vector.load %arg6[%c0_13, %c0_14] : memref<16x16xf32, #tpu.memory_space<vmem>>, vector<16x16xf32>
    tpu.vector_store %arg6[%c0_13, %c0_14], %21 {strides = array<i32>} : memref<16x16xf32, #tpu.memory_space<vmem>>, vector<16x16xf32>,
    return
  }
  func.func @transform_0(%arg0: i32) -> (i32, i32) {
    %c0_i32 = arith.constant 0 : i32
    %c0_i32_0 = arith.constant 0 : i32
    return %arg0, %c0_i32 : i32, i32
  }
  func.func @transform_1(%arg0: i32) -> (i32, i32) {
    %c0_i32 = arith.constant 0 : i32
    %c0_i32_0 = arith.constant 0 : i32
    %c0_i32_1 = arith.constant 0 : i32
    return %c0_i32, %c0_i32_0 : i32, i32
  }
  func.func @transform_2(%arg0: i32) -> (i32, i32) {
    %c0_i32 = arith.constant 0 : i32
    %c0_i32_0 = arith.constant 0 : i32
    %c0_i32_1 = arith.constant 0 : i32
    return %c0_i32, %c0_i32_0 : i32, i32
  }
  func.func @transform_3(%arg0: i32) -> (i32, i32) {
    %c0_i32 = arith.constant 0 : i32
    %c0_i32_0 = arith.constant 0 : i32
    %c0_i32_1 = arith.constant 0 : i32
    return %c0_i32, %c0_i32_0 : i32, i32
  }
  func.func @transform_4(%arg0: i32) -> (i32, i32) {
    %c0_i32 = arith.constant 0 : i32
    %c0_i32_0 = arith.constant 0 : i32
    %c0_i32_1 = arith.constant 0 : i32
    return %c0_i32, %c0_i32_0 : i32, i32
  }
  func.func @transform_5(%arg0: i32) -> (i32, i32) {
    %c0_i32 = arith.constant 0 : i32
    %c0_i32_0 = arith.constant 0 : i32
    return %arg0, %c0_i32 : i32, i32
  }
}

</mosaic_0001>

<bundles_post_ra>
// kernel: embed_branch.1
= control target key start
LH: loop header
LB: loop body
LE: loop exit
PB: predicated region body
PF: predicated region fallthrough
CT: control target
= control target key end

     0   :  { %s1007_s18 = smov 0   ;;  %s1009_s19 = smov 0   ;;  %s1174_s0 = inlined_call_operand.vmem [shape: f32[24,64], index: 0, kind: input, shape index: {}]   ;;  %s1175_s1 = inlined_call_operand.vmem [shape: f32[64,128], index: 1, kind: input, shape index: {}]   ;;  %s1176_s2 = inlined_call_operand.vmem [shape: f32[1,128], index: 2, kind: input, shape index: {}]   ;;  %s1177_s3 = inlined_call_operand.vmem [shape: f32[128,16], index: 3, kind: input, shape index: {}]   ;;  %s1178_s4 = inlined_call_operand.vmem [shape: f32[1,16], index: 4, kind: input, shape index: {}]   ;;  %s1179_s5 = inlined_call_operand.vmem [shape: f32[24,16], index: 5, kind: output, shape index: {}]  }
   0x1   :  { %s1011_s20 = smov 0  }
   0x2 LB: > { %s1020_s21 = sadd.s32 4294967295, %s943_s20   ;;  %s1022_s22 = sadd.s32 1, %s943_s20   ;;  %s943_s20 = sphi %s1011_s20, %s1183_s20   ;;  %s939_s19 = sphi %s1009_s19, %s1182_s19   ;;  %s935_s18 = sphi %s1007_s18, %s1181_s18  }
   0x3   : > { %s129_s23 = ssub.s32 %s943_s20, %s1022_s22  ;;  %s132_s24 = sadd.s32 1, %s939_s19 }
   0x4   : > { %p130_p0 = scmp.eq.s32.totalorder %s129_s23, 0  ;;  %p142_p1 = scmp.ne.s32.totalorder %s939_s19, %s935_s18 }
   0x5   : > { %p143_p2 = scmp.eq.s32.totalorder %s1020_s21, 1  ;;  %p687_p3 = scmp.ge.s32.totalorder %s943_s20, 1 }
   0x6   : > { %s1030_s25 = scalar_select %p130_p0, %s939_s19, %s132_s24  }
   0x7   : > { %p1032_p4 = por %p143_p2, %p142_p1  ;;  %p196_p5 = scmp.lt.s32.totalorder %s943_s20, 3 }
   0x9   : > { %p197_p6 = pnand %p687_p3, %p196_p5 }
   0xa   : > { %s1043_s6 = sshll.u32 (!%p197_p6), %s1020_s21, 1  ;;  %s224_s7 = sand.u32 (!%p197_p6), 1, %s935_s18  }
   0xb   : > { %200 = sbr.rel (%p197_p6) target bundleno = 635 (0x27b), region = 40  ;;  %p232_p7 = scmp.lt.s32.totalorder (!%p197_p6), %s1043_s6, 2 }
  0x10   : > { %v255_v0 = vld [vmem:[%s1175_s1 + $0x38] sm:$0xff]  ;;  %v254_v1 = vld [vmem:[%s1175_s1 + $0x30] sm:$0xff]  ;;  %v253_v2 = vld [vmem:[%s1175_s1 + $0x28] sm:$0xff]  ;;  %s233_s11 = scalar_select %p232_p7, %s1043_s6, 2  ;;  %vm263_vm0 = vcmask 523264   ;;  %vm449_vm1 = vcmask 130048  }
  0x11   : > { %743 = vmatprep.subr.mxu0 %v255_v0  ;;  %v364_v3 = vld [vmem:[%s1177_s3 + $0x78] sm:$0xff]  ;;  %v363_v4 = vld [vmem:[%s1177_s3 + $0x70] sm:$0xff]  ;;  %v252_v5 = vld [vmem:[%s1175_s1 + $0x20] sm:$0xff]  ;;  %s472_s9 = ssub.s32 (%p1032_p4), 3, %s1043_s6  ;;  %s712_s18 = sshll.u32 (%p1032_p4), %s1020_s21, 4 }
  0x12   : > { %744 = vmatpush3.msra.mxu0 %v255_v0  ;;  %762 = vmatprep.subr.mxu1 %v364_v3  ;;  %v362_v6 = vld [vmem:[%s1177_s3 + $0x68] sm:$0xff]  ;;  %s690_s20 = sshll.u32 %s233_s11, 3  ;;  %v251_v7 = vld [vmem:[%s1175_s1 + $0x18] sm:$0xff]  ;;  %v361_v9 = vld [vmem:[%s1177_s3 + $0x60] sm:$0xff]  ;;  %p473_p8 = scmp.lt.s32.totalorder (%p1032_p4), %s472_s9, 2 }
  0x13   : > { %745 = vmatprep.subr.mxu0 %v254_v1  ;;  %763 = vmatpush3.msra.mxu1 %v364_v3  ;;  %s235_s29 = scalar_lea.vmem %s1174_s0, %s690_s20  ;;  %v250_v10 = vld [vmem:[%s1175_s1 + $0x10] sm:$0xff]  ;;  %v360_v11 = vld [vmem:[%s1177_s3 + $0x58] sm:$0xff]  ;;  %v249_v12 = vld [vmem:[%s1175_s1 + $0x8] sm:$0xff]  ;;  %s1140_s12 = scalar_lea.vmem (%p1032_p4), %s1179_s5, %s712_s18  }
  0x14   : > { %746 = vmatpush3.msra.mxu0 %v254_v1  ;;  %764 = vmatprep.subr.mxu1 %v363_v4  ;;  %v246_v8 = vld [vmem:[%s235_s29] sm:$0xff]  ;;  %v359_v13 = vld [vmem:[%s1177_s3 + $0x50] sm:$0xff]  ;;  %v358_v15 = vld [vmem:[%s1177_s3 + $0x48] sm:$0xff] }
  0x15   : > { %747 = vmatprep.subr.mxu0 %v253_v2  ;;  %765 = vmatpush3.msra.mxu1 %v363_v4  ;;  %v248_v14 = vld [vmem:[%s1175_s1] sm:$0xff]  ;;  %v247_v16 = vld [vmem:[%s235_s29 + $0x8] sm:$0xff]  ;;  %v356_v18 = vld [vmem:[%s1177_s3 + $0x38] sm:$0xff]  ;;  %s688_s29 = sshll.u32 %s224_s7, 4 }
  0x16   : > { %748 = vmatpush3.msra.mxu0 %v253_v2  ;;  %766 = vmatprep.subr.mxu1 %v362_v6  ;;  %v357_v17 = vld [vmem:[%s1177_s3 + $0x40] sm:$0xff]  ;;  %v355_v19 = vld [vmem:[%s1177_s3 + $0x30] sm:$0xff]  ;;  %v354_v20 = vld [vmem:[%s1177_s3 + $0x28] sm:$0xff]  ;;  %s1127_s8 = scalar_lea.vmem [#allocation2], %s688_s29  }
  0x17   : > { %749 = vmatprep.subr.mxu0 %v252_v5  ;;  %759 = vmatprep.mubr.msk.f32.mxu0 %vm263_vm0, %v246_v8  ;;  %v353_v21 = vld [vmem:[%s1177_s3 + $0x20] sm:$0xff]  ;;  %v352_v22 = vld [vmem:[%s1177_s3 + $0x18] sm:$0xff]  ;;  %v351_v23 = vld [vmem:[%s1177_s3 + $0x10] sm:$0xff] }
  0x18   : > { %750 = vmatpush3.msra.mxu0 %v252_v5  ;;  %767 = vmatpush3.msra.mxu1 %v362_v6  ;;  %v350_v24 = vld [vmem:[%s1177_s3 + $0x8] sm:$0xff]  ;;  %v349_v25 = vld [vmem:[%s1177_s3] sm:$0xff] }
  0x19   : > { %751 = vmatprep.subr.mxu0 %v251_v7  ;;  %768 = vmatprep.subr.mxu1 %v361_v9  ;;  %v691_v26 = vld [vmem:[%s1176_s2] ss:$0 sm:$0xff] }
  0x1a   : > { %752 = vmatpush3.msra.mxu0 %v251_v7  ;;  %769 = vmatpush3.msra.mxu1 %v361_v9  ;;  %v694_v36 = vld [vmem:[%s1178_s4] ss:$0 sm:$0xff] }
  0x1b   : > { %753 = vmatprep.subr.mxu0 %v250_v10  ;;  %770 = vmatprep.subr.mxu1 %v360_v11 }
  0x1c   : > { %754 = vmatpush3.msra.mxu0 %v250_v10  ;;  %771 = vmatpush3.msra.mxu1 %v360_v11 }
  0x1d   : > { %755 = vmatprep.subr.mxu0 %v249_v12  ;;  %772 = vmatprep.subr.mxu1 %v359_v13 }
  0x1e   : > { %756 = vmatpush3.msra.mxu0 %v249_v12  ;;  %773 = vmatpush3.msra.mxu1 %v359_v13 }
  0x1f   : > { %757 = vmatprep.subr.mxu0 %v248_v14  ;;  %774 = vmatprep.subr.mxu1 %v358_v15 }
  0x20   : > { %758 = vmatpush3.msra.mxu0 %v248_v14  ;;  %775 = vmatpush3.msra.mxu1 %v358_v15 }
  0x21   : > { %760 = vmatmul.mubr.msk.f32.vlgmr.msra.gmra.mxu0 %vm263_vm0, %v247_v16  ;;  %776 = vmatprep.subr.mxu1 %v357_v17 }
  0x22   : > { %777 = vmatpush3.msra.mxu1 %v357_v17 }
  0x23   : > { %778 = vmatprep.subr.mxu1 %v356_v18 }
  0x24   : > { %779 = vmatpush3.msra.mxu1 %v356_v18 }
  0x25   : > { %780 = vmatprep.subr.mxu1 %v355_v19 }
  0x26   : > { %781 = vmatpush3.msra.mxu1 %v355_v19 }
  0x27   : > { %782 = vmatprep.subr.mxu1 %v354_v20 }
  0x28   : > { %783 = vmatpush3.msra.mxu1 %v354_v20 }
  0x29   : > { %784 = vmatprep.subr.mxu1 %v353_v21 }
  0x2a   : > { %785 = vmatpush3.msra.mxu1 %v353_v21 }
  0x2b   : > { %786 = vmatprep.subr.mxu1 %v352_v22 }
  0x2c   : > { %787 = vmatpush3.msra.mxu1 %v352_v22 }
  0x2d   : > { %788 = vmatprep.subr.mxu1 %v351_v23 }
  0x2e   : > { %789 = vmatpush3.msra.mxu1 %v351_v23 }
  0x2f   : > { %790 = vmatprep.subr.mxu1 %v350_v24 }
  0x30   : > { %791 = vmatpush3.msra.mxu1 %v350_v24 }
  0x31   : > { %792 = vmatprep.subr.mxu1 %v349_v25 }
  0x32   : > { %793 = vmatpush3.msra.mxu1 %v349_v25 }
  0xe1   : > { %v761_v27 = vpop.f32.mrf.mxu0 }
  0xe2   : > { %v342_v28 = vadd.f32 %v761_v27, %v691_v26 }
  0xe3   : > { %v336_v29 = vpop.f32.mrf.mxu0 }
  0xe4   : > { %v337_v30 = vadd.f32 %v691_v26, %v336_v29  ;;  %v346_v31 = vmul.f32 0.01, %v342_v28 }
  0xe6   : > { %v345_v32 = vmul.f32 0.01, %v337_v30  ;;  %v348_v34 = vmax.f32 %v342_v28, %v346_v31 }
  0xe8   : > { %v347_v33 = vmax.f32 %v337_v30, %v345_v32 }
  0xea   : > { %794 = vmatprep.mubr.f32.mxu1 %v347_v33 }
  0xeb   : > { %795 = vmatmul.mubr.f32.vlgmr.msra.gmra.mxu1 %v348_v34 }
 0x1ab   : > { %v796_v35 = vpop.f32.mrf.mxu1 }
 0x1ac   : > { %v444_v38 = vadd.f32 %v796_v35, %v694_v36 }
 0x1ad   : > { %v438_v37 = vpop.f32.mrf.mxu1 }
 0x1ae   : > { %v439_v39 = vadd.f32 %v694_v36, %v438_v37  ;;  %v448_v42 = vmul.f32 %v444_v38, %v444_v38 }
 0x1b0   : > { %v447_v40 = vmul.f32 %v439_v39, %v439_v39  ;;  %v453_v43 = vsel %vm449_vm1, %v448_v42, 0.0 }
 0x1b2   : > { %v450_v41 = vsel %vm449_vm1, %v447_v40, 0.0 }
 0x1b3   : > { %451 = vadd.xlane.f32.xlu0 %v450_v41 }
 0x1b7   : > { %454 = vadd.xlane.f32.xlu0 %v453_v43 }
 0x23c   : > { %v452_v44 = vpop.xlane.xlu0 %451 }
 0x23d   : > { %v456_v45 = vmax.f32 %v452_v44, 1e-24 }
 0x23f   : > { %885 = vrsqrt.f32 %v456_v45 }
 0x240   : > { %v455_v46 = vpop.xlane.xlu0 %454 }
 0x241   : > { %v457_v47 = vmax.f32 %v455_v46, 1e-24 }
 0x243   : > { %887 = vrsqrt.f32 %v457_v47 }
 0x24c   : > { %v886_v48 = vpop.eup %885 }
 0x24d   : > { %v460_v49 = vmul.f32 %v886_v48, %v439_v39 }
 0x24f   : > { %462 = vst.msk [vmem:[%s1127_s8] sm:$0xff] %vm449_vm1, %v460_v49  ;;  %470 = sbr.rel (!%p1032_p4) target bundleno = 635 (0x27b), region = 44 }
 0x250   : > { %v888_v50 = vpop.eup %887 }
 0x251   : > { %v461_v51 = vmul.f32 %v888_v50, %v444_v38 }
 0x253   : > { %463 = vst.msk [vmem:[%s1127_s8 + $0x8] sm:$0xff] %vm449_vm1, %v461_v51 }
 0x254   : > { %s1185_s9 = smov (!%p473_p8, %s472_s9), 2 }
 0x255   : > { %s697_s13 = sshll.u32 %s1185_s9, 7 }
 0x256   : > { %p700_p9 = scmp.eq.s32.totalorder %s697_s13, 0 }
 0x257   : > { %s1146_s14 = sshrl.u32 (!%p700_p9), %s1185_s9, 1 }
 0x258   : > { %481 = sbr.rel (%p700_p9) target bundleno = 635 (0x27b), region = 48  ;;  %p701_p10 = scmp.le.s32.totalorder (!%p700_p9), %s1146_s14, 0 }
 0x25d   : > { %640 = sbr.rel (%p701_p10) target bundleno = 618 (0x26a), region = 124  ;;  %s945_s21 = smov (!%p701_p10), %s1140_s12  }
 0x25e   : > { %s949_s26 = smov (!%p701_p10), %s1127_s8   ;;  %s953_s6 = smov (!%p701_p10), 0  }
 0x25f   : > { %s957_s15 = smov (!%p701_p10), 0  }
 0x262 LB: >> { %v546_v52 = vld [vmem:[%s951_s26] sm:$0xff]  ;;  %v548_v53 = vld [vmem:[%s951_s26 + $0x8] sm:$0xff]  ;;  %s550_s16 = sadd.s32 1, %s955_s6  ;;  %s540_s15 = sadd.s32 1, %s959_s15   ;;  %s959_s15 = sphi %s957_s15, %s540_s15   ;;  %s955_s6 = sphi %s953_s6, %s954_s6   ;;  %s951_s26 = sphi %s949_s26, %s555_s26   ;;  %s947_s21 = sphi %s945_s21, %s556_s21  }
 0x263   : >> { %547 = vst [vmem:[%s947_s21] sm:$0xff] %v546_v52  ;;  %549 = vst [vmem:[%s947_s21 + $0x8] sm:$0xff] %v548_v53  ;;  %p551_p11 = scmp.ge.s32.totalorder %s550_s16, %s1146_s14  ;;  %p539_p12 = scmp.ge.s32.totalorder %s540_s15, %s1146_s14 }
 0x265   : >> { %s1187_s16 = smov (%p551_p11, %s550_s16), 0  ;;  %542 = sbr.rel (!%p539_p12) target bundleno = 610 (0x262), region = 130 }
 0x266   : >> { %s702_s17 = sshll.u32 %s1187_s16, 4  ;;  %s954_s6 = smov %s1187_s16  }
 0x267   : >> { %s555_s26 = scalar_lea.vmem %s1127_s8, %s702_s17 [#allocation2]   ;;  %s556_s21 = scalar_lea.vmem %s1140_s12, %s702_s17  }
 0x26a PF: > { %s1156_s20 = sand.u32 1, %s1185_s9   ;;  %s713_s23 = sshll.u32 %s1146_s14, 4 }
 0x26b   : > { %s561_s24 = scalar_lea.vmem %s1127_s8, %s713_s23 [#allocation2]   ;;  %s563_s27 = scalar_lea.vmem %s1140_s12, %s713_s23  }
 0x26c   : > { %p707_p13 = scmp.le.s32.totalorder %s1156_s20, 0 }
 0x26d   : > { %s961_s28 = smov (!%p707_p13), %s563_s27   ;;  %s965_s30 = smov (!%p707_p13), %s561_s24  }
 0x26e   : > { %654 = sbr.rel (%p707_p13) target bundleno = 635 (0x27b), region = 135  ;;  %s969_s7 = smov (!%p707_p13), 0  }
 0x26f   : > { %s973_s29 = smov (!%p707_p13), 0  }
 0x273 LB: >> { %v573_v54 = vld [vmem:[%s967_s30] sm:$0xff]  ;;  %s575_s9 = sadd.s32 1, %s971_s7  ;;  %s567_s29 = sadd.s32 1, %s975_s29   ;;  %s975_s29 = sphi %s973_s29, %s567_s29   ;;  %s971_s7 = sphi %s969_s7, %s970_s7   ;;  %s967_s30 = sphi %s965_s30, %s580_s30   ;;  %s963_s28 = sphi %s961_s28, %s581_s28  }
 0x274   : >> { %574 = vst [vmem:[%s963_s28] sm:$0xff] %v573_v54  ;;  %p576_p0 = scmp.ge.s32.totalorder %s575_s9, %s1156_s20  ;;  %p566_p1 = scmp.ge.s32.totalorder %s567_s29, %s1156_s20 }
 0x276   : >> { %s1189_s9 = smov (%p576_p0, %s575_s9), 0  ;;  %569 = sbr.rel (!%p566_p1) target bundleno = 627 (0x273), region = 141 }
 0x277   : >> { %s708_s8 = sshll.u32 %s1189_s9, 3  ;;  %s970_s7 = smov %s1189_s9  }
 0x278   : >> { %s580_s30 = scalar_lea.vmem %s561_s24, %s708_s8 [#allocation2]   ;;  %s581_s28 = scalar_lea.vmem %s563_s27, %s708_s8  }
 0x27b PF: > { %p12_p2 = scmp.ge.s32.totalorder %s1022_s22, 4   ;;  %s1181_s18 = smov %s939_s19 }
 0x27c   : > { %s1182_s19 = smov %s1030_s25  ;;  %s1183_s20 = smov %s1022_s22 }
 0x27d   :  { %14 = sbr.rel (!%p12_p2) target bundleno = 2 (0x2), region = 152 }

</bundles_post_ra>
